<compile_context>
chip_gen: v7x
topology: tpu7x:2x2x1
jax: 0.10.0
libtpu: 0.0.40
codegen_flags: <defaults>
</compile_context>

<pallas_src>
import jax
import jax.numpy as jnp
from jax.experimental import pallas as pl
from jax.experimental.pallas import tpu as pltpu

INPUT_DIM = 16
HIDDEN_DIM = 32
BATCH = 2
OUTPUT_DIM = 1
NUM_LAYERS = 2

REQ_PER_STEP = 64                       # requests per grid step
LANES_PER_STEP = REQ_PER_STEP * BATCH   # 128 lanes -> exactly one vreg row

# ---- packed parameter slab layout (rows x 128 lanes, f32) -------------------
# Row offsets are multiples of 8 so every static slice sits on a sublane tile.
_H = HIDDEN_DIM
_G3 = 3 * HIDDEN_DIM        # 96 gate rows, order [i, o, g] (f dropped)
W0_ROW = 0                  # rows   0: 96, cols 0:16  -> W_ih_l0 reordered (gate-major)
W1_ROW = 96                 # rows  96:192, cols 0:32  -> W_ih_l1 reordered
B0_ROW = 192                # rows 192:288, all lanes  -> (b_ih_l0 + b_hh_l0), lane-replicated
B1_ROW = 288                # rows 288:384, all lanes  -> (b_ih_l1 + b_hh_l1), lane-replicated
WLIN_ROW = 384              # rows 384:416, all lanes  -> linear weight column, lane-replicated
BLIN_ROW = 416              # row  416,     all lanes  -> linear bias, lane-replicated
PACK_ROWS = 424             # padded to a multiple of 8
PACK_LANES = 128


def _lstm_kernel(x_ref, p_ref, out_ref):
    """One grid step: 64 requests (x batch 2) on the lane axis.

    x_ref:   (INPUT_DIM, 128)   feature-major input block
    p_ref:   (PACK_ROWS, 128)   resident parameter slab
    out_ref: (1, 1, 128)        lane-dense output row
    """
    H = HIDDEN_DIM
    x_t = x_ref[...]                                     # (16, 128)

    w0 = p_ref[W0_ROW:W0_ROW + _G3, 0:INPUT_DIM]         # (96, 16)
    w1 = p_ref[W1_ROW:W1_ROW + _G3, 0:HIDDEN_DIM]        # (96, 32)
    b0 = p_ref[B0_ROW:B0_ROW + _G3, :]                   # (96, 128) lane-replicated
    b1 = p_ref[B1_ROW:B1_ROW + _G3, :]                   # (96, 128)
    wlin = p_ref[WLIN_ROW:WLIN_ROW + H, :]               # (32, 128) lane-replicated
    blin = p_ref[BLIN_ROW:BLIN_ROW + 1, :]               # (1, 128)

    # ---- layer 0: gates = W0 @ x + b0 ; rows [i, o, g], f dropped -----------
    g0 = jnp.dot(w0, x_t, preferred_element_type=jnp.float32) + b0      # (96, 128)
    io0 = jax.nn.sigmoid(g0[0:2 * H, :])                 # one EUP pass covers i and o
    gg0 = jnp.tanh(g0[2 * H:3 * H, :])
    h0 = io0[H:2 * H, :] * jnp.tanh(io0[0:H, :] * gg0)   # o * tanh(i*g); c_prev == 0

    # ---- layer 1: input is h0, again zero initial state ---------------------
    g1 = jnp.dot(w1, h0, preferred_element_type=jnp.float32) + b1       # (96, 128)
    io1 = jax.nn.sigmoid(g1[0:2 * H, :])
    gg1 = jnp.tanh(g1[2 * H:3 * H, :])
    h1 = io1[H:2 * H, :] * jnp.tanh(io1[0:H, :] * gg1)   # (32, 128)

    # ---- linear head: VPU multiply + sublane reduce -> lane-dense row -------
    y = jnp.sum(h1 * wlin, axis=0, keepdims=True) + blin                # (1, 128)
    out_ref[...] = y.reshape(1, 1, LANES_PER_STEP)


def pack_params(params):
    """One-time parameter prep (hoisted out of the hot path): transpose to
    gate-major, reorder gates to [i, o, g], drop f, fold b_ih + b_hh,
    lane-replicate biases / head weights, pack into one (424, 128) slab."""
    (w_ih0, w_hh0, b_ih0, b_hh0,
     w_ih1, w_hh1, b_ih1, b_hh1,
     w_lin, b_lin) = params
    H = HIDDEN_DIM

    def reorder_w(w_ih):            # (4H, K) -> (3H, K), row order [i, o, g]
        return jnp.concatenate([w_ih[0:H], w_ih[3 * H:4 * H], w_ih[2 * H:3 * H]], axis=0)

    def reorder_b(b_ih, b_hh):      # (4H,) -> (3H,), order [i, o, g]
        b = b_ih + b_hh             # h_prev == 0 => W_hh term vanishes, biases remain
        return jnp.concatenate([b[0:H], b[3 * H:4 * H], b[2 * H:3 * H]])

    slab = jnp.zeros((PACK_ROWS, PACK_LANES), jnp.float32)
    slab = slab.at[W0_ROW:W0_ROW + _G3, 0:INPUT_DIM].set(reorder_w(w_ih0))
    slab = slab.at[W1_ROW:W1_ROW + _G3, 0:HIDDEN_DIM].set(reorder_w(w_ih1))
    slab = slab.at[B0_ROW:B0_ROW + _G3, :].set(
        jnp.broadcast_to(reorder_b(b_ih0, b_hh0)[:, None], (_G3, PACK_LANES)))
    slab = slab.at[B1_ROW:B1_ROW + _G3, :].set(
        jnp.broadcast_to(reorder_b(b_ih1, b_hh1)[:, None], (_G3, PACK_LANES)))
    slab = slab.at[WLIN_ROW:WLIN_ROW + H, :].set(
        jnp.broadcast_to(w_lin.reshape(H)[:, None], (H, PACK_LANES)))
    slab = slab.at[BLIN_ROW, :].set(jnp.broadcast_to(b_lin.reshape(1), (PACK_LANES,)))
    return slab


@jax.jit
def lstm_forward_batch(xs, packed):
    """xs: (N, BATCH, INPUT_DIM) f32 -- N independent inferences.
    packed: (424, 128) f32 slab.  Returns (N, BATCH) f32."""
    n = xs.shape[0]
    n_steps = -(-n // REQ_PER_STEP)
    n_pad = n_steps * REQ_PER_STEP

    x_flat = xs.astype(jnp.float32).reshape(n * BATCH, INPUT_DIM)
    if n_pad != n:
        x_flat = jnp.pad(x_flat, ((0, (n_pad - n) * BATCH), (0, 0)))
    # Feature-major layout: requests on the lane axis.  (In a real serving path
    # the caller could hand inputs over in this layout directly.)
    x_t = x_flat.T                                       # (INPUT_DIM, n_pad*BATCH)

    out = pl.pallas_call(
        _lstm_kernel,
        out_shape=jax.ShapeDtypeStruct((n_steps, 1, LANES_PER_STEP), jnp.float32),
        grid=(n_steps,),
        in_specs=[
            pl.BlockSpec((INPUT_DIM, LANES_PER_STEP), lambda i: (0, i)),
            # Constant block index -> slab DMA'd once, VMEM-resident all grid.
            pl.BlockSpec((PACK_ROWS, PACK_LANES), lambda i: (0, 0)),
        ],
        out_specs=pl.BlockSpec((1, 1, LANES_PER_STEP), lambda i: (i, 0, 0)),
        compiler_params=pltpu.CompilerParams(
            dimension_semantics=("parallel",)),
    )(x_t, packed)

    return out.reshape(n_pad, BATCH)[:n]


@jax.jit
def lstm_forward(x, packed):
    """Single inference matching the PyTorch module: x (BATCH, INPUT_DIM) -> (BATCH,)."""
    return lstm_forward_batch(x[None], packed)[0]


def _reference_forward(x, params):
    """Pure-JAX replica of the PyTorch forward (correctness check)."""
    (w_ih0, w_hh0, b_ih0, b_hh0,
     w_ih1, w_hh1, b_ih1, b_hh1,
     w_lin, b_lin) = params
    H = HIDDEN_DIM

    def cell(inp, w_ih, w_hh, b_ih, b_hh, h_prev, c_prev):
        gates = inp @ w_ih.T + b_ih + h_prev @ w_hh.T + b_hh
        i = jax.nn.sigmoid(gates[:, 0 * H:1 * H])
        f = jax.nn.sigmoid(gates[:, 1 * H:2 * H])
        g = jnp.tanh(gates[:, 2 * H:3 * H])
        o = jax.nn.sigmoid(gates[:, 3 * H:4 * H])
        c = f * c_prev + i * g
        h = o * jnp.tanh(c)
        return h, c

    zeros = jnp.zeros((x.shape[0], H), jnp.float32)
    h0, _ = cell(x, w_ih0, w_hh0, b_ih0, b_hh0, zeros, zeros)
    h1, _ = cell(h0, w_ih1, w_hh1, b_ih1, b_hh1, zeros, zeros)
    return (h1 @ w_lin.T + b_lin).reshape(-1)


def _init_params(key):
    """Deterministic init mimicking PyTorch's U(-1/sqrt(H), 1/sqrt(H))."""
    k = 1.0 / jnp.sqrt(jnp.float32(HIDDEN_DIM))
    shapes = [
        (4 * HIDDEN_DIM, INPUT_DIM),    # w_ih_l0
        (4 * HIDDEN_DIM, HIDDEN_DIM),   # w_hh_l0
        (4 * HIDDEN_DIM,),              # b_ih_l0
        (4 * HIDDEN_DIM,),              # b_hh_l0
        (4 * HIDDEN_DIM, HIDDEN_DIM),   # w_ih_l1
        (4 * HIDDEN_DIM, HIDDEN_DIM),   # w_hh_l1
        (4 * HIDDEN_DIM,),              # b_ih_l1
        (4 * HIDDEN_DIM,),              # b_hh_l1
        (OUTPUT_DIM, HIDDEN_DIM),       # linear weight
        (OUTPUT_DIM,),                  # linear bias
    ]
    keys = jax.random.split(key, len(shapes))
    return tuple(
        jax.random.uniform(kk, s, jnp.float32, minval=-k, maxval=k)
        for kk, s in zip(keys, shapes)
    )


if __name__ == "__main__":
    root = jax.random.PRNGKey(0)
    kx, kp, kb = jax.random.split(root, 3)
    params = _init_params(kp)

    # One-time packing (hoisted out of the per-call hot path).
    packed = jax.block_until_ready(pack_params(params))

    # ---- single inference (the exact PyTorch forward contract) --------------
    x = jax.random.normal(kx, (BATCH, INPUT_DIM), jnp.float32)
    y = jax.block_until_ready(lstm_forward(x, packed))
    y_ref = _reference_forward(x, params)
    assert y.shape == (BATCH,)
    assert jnp.allclose(y, y_ref, atol=1e-5, rtol=1e-5), (y, y_ref)

    # ---- batched serving path: one pallas_call, weights resident over grid --
    N = 130                            # deliberately not a multiple of REQ_PER_STEP
    xs = jax.random.normal(kb, (N, BATCH, INPUT_DIM), jnp.float32)
    ys = jax.block_until_ready(lstm_forward_batch(xs, packed))
    ys_ref = jax.vmap(lambda xi: _reference_forward(xi, params))(xs)
    assert ys.shape == (N, BATCH)
    assert jnp.allclose(ys, ys_ref, atol=1e-5, rtol=1e-5)

    print("KERNEL_OK")
</pallas_src>

<mosaic_0001>
module attributes {stable_mosaic.version = 11 : i64} {
  func.func @_lstm_kernel(%arg0: i32, %arg1: memref<16x128xf32, #tpu.memory_space<vmem>>, %arg2: memref<424x128xf32, #tpu.memory_space<vmem>>, %arg3: memref<1x1x128xf32, #tpu.memory_space<vmem>>) attributes {dimension_semantics = [#tpu.dimension_semantics<parallel>], iteration_bounds = array<i64: 1>, scalar_prefetch = 0 : i64, scratch_operands = 0 : i64, tpu.core_type = #tpu.core_type<tc>, window_params = [{transform_indices = @transform_0, window_bounds = array<i64: 16, 128>}, {pipeline_mode = #tpu.pipeline_mode<synchronous>, transform_indices = @transform_1, window_bounds = array<i64: 424, 128>}, {transform_indices = @transform_2, window_bounds = array<i64: 1, 1, 128>}]} {
    %c0 = arith.constant 0 : index
    %c0_0 = arith.constant 0 : index
    %0 = vector.load %arg1[%c0, %c0_0] : memref<16x128xf32, #tpu.memory_space<vmem>>, vector<16x128xf32>
    %c0_1 = arith.constant 0 : index
    %c0_2 = arith.constant 0 : index
    %1 = vector.load %arg2[%c0_1, %c0_2] : memref<424x128xf32, #tpu.memory_space<vmem>>, vector<96x16xf32>
    %c96 = arith.constant 96 : index
    %c0_3 = arith.constant 0 : index
    %2 = vector.load %arg2[%c96, %c0_3] : memref<424x128xf32, #tpu.memory_space<vmem>>, vector<96x32xf32>
    %c192 = arith.constant 192 : index
    %c0_4 = arith.constant 0 : index
    %3 = vector.load %arg2[%c192, %c0_4] : memref<424x128xf32, #tpu.memory_space<vmem>>, vector<96x128xf32>
    %c288 = arith.constant 288 : index
    %c0_5 = arith.constant 0 : index
    %4 = vector.load %arg2[%c288, %c0_5] : memref<424x128xf32, #tpu.memory_space<vmem>>, vector<96x128xf32>
    %c384 = arith.constant 384 : index
    %c0_6 = arith.constant 0 : index
    %5 = vector.load %arg2[%c384, %c0_6] : memref<424x128xf32, #tpu.memory_space<vmem>>, vector<32x128xf32>
    %c416 = arith.constant 416 : index
    %c0_7 = arith.constant 0 : index
    %6 = vector.load %arg2[%c416, %c0_7] : memref<424x128xf32, #tpu.memory_space<vmem>>, vector<1x128xf32>
    %cst = arith.constant dense<0.000000e+00> : vector<96x128xf32>
    %7 = tpu.matmul %1, %0, %cst {dimension_numbers = #tpu.dot_dimension_numbers<[1], [0], [0], [1], [0, 0, 1, 1], [], []>} : vector<96x16xf32>, vector<16x128xf32>, vector<96x128xf32> -> vector<96x128xf32>
    %8 = arith.addf %7, %3 : vector<96x128xf32>
    %9 = vector.extract_strided_slice %8 {offsets = [0, 0], sizes = [64, 128], strides = [1, 1]} : vector<96x128xf32> to vector<64x128xf32>
    %10 = arith.negf %9 : vector<64x128xf32>
    %11 = math.exp %10 : vector<64x128xf32>
    %cst_8 = arith.constant 1.000000e+00 : f32
    %12 = vector.broadcast %cst_8 : f32 to vector<64x128xf32>
    %13 = arith.addf %12, %11 : vector<64x128xf32>
    %14 = arith.divf %12, %13 : vector<64x128xf32>
    %15 = vector.extract_strided_slice %8 {offsets = [64, 0], sizes = [32, 128], strides = [1, 1]} : vector<96x128xf32> to vector<32x128xf32>
    %16 = math.tanh %15 : vector<32x128xf32>
    %17 = vector.extract_strided_slice %14 {offsets = [32, 0], sizes = [32, 128], strides = [1, 1]} : vector<64x128xf32> to vector<32x128xf32>
    %18 = vector.extract_strided_slice %14 {offsets = [0, 0], sizes = [32, 128], strides = [1, 1]} : vector<64x128xf32> to vector<32x128xf32>
    %19 = arith.mulf %18, %16 : vector<32x128xf32>
    %20 = math.tanh %19 : vector<32x128xf32>
    %21 = arith.mulf %17, %20 : vector<32x128xf32>
    %cst_9 = arith.constant dense<0.000000e+00> : vector<96x128xf32>
    %22 = tpu.matmul %2, %21, %cst_9 {dimension_numbers = #tpu.dot_dimension_numbers<[1], [0], [0], [1], [0, 0, 1, 1], [], []>} : vector<96x32xf32>, vector<32x128xf32>, vector<96x128xf32> -> vector<96x128xf32>
    %23 = arith.addf %22, %4 : vector<96x128xf32>
    %24 = vector.extract_strided_slice %23 {offsets = [0, 0], sizes = [64, 128], strides = [1, 1]} : vector<96x128xf32> to vector<64x128xf32>
    %25 = arith.negf %24 : vector<64x128xf32>
    %26 = math.exp %25 : vector<64x128xf32>
    %cst_10 = arith.constant 1.000000e+00 : f32
    %27 = vector.broadcast %cst_10 : f32 to vector<64x128xf32>
    %28 = arith.addf %27, %26 : vector<64x128xf32>
    %29 = arith.divf %27, %28 : vector<64x128xf32>
    %30 = vector.extract_strided_slice %23 {offsets = [64, 0], sizes = [32, 128], strides = [1, 1]} : vector<96x128xf32> to vector<32x128xf32>
    %31 = math.tanh %30 : vector<32x128xf32>
    %32 = vector.extract_strided_slice %29 {offsets = [32, 0], sizes = [32, 128], strides = [1, 1]} : vector<64x128xf32> to vector<32x128xf32>
    %33 = vector.extract_strided_slice %29 {offsets = [0, 0], sizes = [32, 128], strides = [1, 1]} : vector<64x128xf32> to vector<32x128xf32>
    %34 = arith.mulf %33, %31 : vector<32x128xf32>
    %35 = math.tanh %34 : vector<32x128xf32>
    %36 = arith.mulf %32, %35 : vector<32x128xf32>
    %37 = arith.mulf %36, %5 : vector<32x128xf32>
    %cst_11 = arith.constant dense<0.000000e+00> : vector<128xf32>
    %38 = vector.multi_reduction <add>, %37, %cst_11 [0] : vector<32x128xf32> to vector<128xf32>
    %39 = vector.shape_cast %38 : vector<128xf32> to vector<1x128xf32>
    %40 = arith.addf %39, %6 : vector<1x128xf32>
    %41 = vector.shape_cast %40 : vector<1x128xf32> to vector<1x1x128xf32>
    %c0_12 = arith.constant 0 : index
    %c0_13 = arith.constant 0 : index
    %c0_14 = arith.constant 0 : index
    %42 = vector.load %arg3[%c0_12, %c0_13, %c0_14] : memref<1x1x128xf32, #tpu.memory_space<vmem>>, vector<1x1x128xf32>
    tpu.vector_store %arg3[%c0_12, %c0_13, %c0_14], %41 {strides = array<i32>} : memref<1x1x128xf32, #tpu.memory_space<vmem>>, vector<1x1x128xf32>,
    return
  }
  func.func @transform_0(%arg0: i32) -> (i32, i32) {
    %c0_i32 = arith.constant 0 : i32
    %c0_i32_0 = arith.constant 0 : i32
    return %c0_i32, %arg0 : i32, i32
  }
  func.func @transform_1(%arg0: i32) -> (i32, i32) {
    %c0_i32 = arith.constant 0 : i32
    %c0_i32_0 = arith.constant 0 : i32
    %c0_i32_1 = arith.constant 0 : i32
    return %c0_i32, %c0_i32_0 : i32, i32
  }
  func.func @transform_2(%arg0: i32) -> (i32, i32, i32) {
    %c0_i32 = arith.constant 0 : i32
    %c0_i32_0 = arith.constant 0 : i32
    %c0_i32_1 = arith.constant 0 : i32
    return %arg0, %c0_i32, %c0_i32_0 : i32, i32, i32
  }
}

</mosaic_0001>

<bundles_post_ra>
// kernel: lstm_forward_batch.1
= control target key start
LH: loop header
LB: loop body
LE: loop exit
PB: predicated region body
PF: predicated region fallthrough
CT: control target
= control target key end

     0   :  { %7 = vsyncpa [#allocation3], 0  ;;  %s805_s9 = smov [#allocation2]   ;;  %s868_s0 = inlined_call_operand.vmem [shape: f32[16,128], index: 0, kind: input, shape index: {}]   ;;  %s869_s1 = inlined_call_operand.hbm [shape: f32[424,128], index: 1, kind: input, shape index: {}]   ;;  %s870_s2 = inlined_call_operand.vmem [shape: f32[1,1,128], index: 2, kind: output, shape index: {}]  }
   0x1   :  { %s15_s10 = sshll.u32 %s805_s9, 4  ;;  %s781_s13 = scalar_lea.hbm %s869_s1, 6784  ;;  %s16_s10 = int_to_ptr.vmem [resolvable:$true] %s15_s10 }
   0x2   :  { %p782_p0 = scmp.ne.s32.totalorder %s869_s1, %s781_s13  ;;  %p785_p1 = scmp.lt.u32.totalorder %s781_s13, %s869_s1 }
   0x4   :  { %p787_p2 = pnand %p785_p1, %p782_p0 }
   0x6   :  { %790 = shalt.err (!%p787_p2)
}
   0x7   :  { %s791_s18 = scalar_lea.vmem %s16_s10, 6784  ;;  %p796_p4 = scmp.lt.s32.totalorder %s16_s10, %s16_s10 }
   0x8   :  { %p792_p3 = scmp.ne.s32.totalorder %s16_s10, %s791_s18  ;;  %p797_p5 = scmp.lt.s32.totalorder %s791_s18, %s791_s18 }
   0xa   :  { %p798_p6 = por %p797_p5, %p796_p4 }
   0xc   :  { %p799_p7 = pnand %p798_p6, %p792_p3 }
   0xe   :  { %802 = shalt.err (!%p799_p7)
}
   0xf   :  { %s806_s19 = smov 128   ;;  %s807_s20 = smov 8  }
  0x10   :  { %21 = dma.hbm_to_vmem [thread:$0]  %s869_s1, 6784, %s16_s10, [#allocation3], %s806_s19, %s806_s19, %s807_s20  }
  0x11   :  { %803 = dma.done.wait [#allocation3], 6784  }
  0x12   :  { %804 = vsyncadd [#allocation3], 4294960512  ;;  %vm80_vm0 = vcmask 130048   ;;  %v25_v0 = vld [vmem:[%s868_s0] sm:$0xff]  ;;  %v26_v1 = vld [vmem:[%s868_s0 + $0x8] sm:$0xff]  ;;  %vm306_vm1 = vcmask 261120  }
  0x13   :  { %v27_v2 = vld [vmem:[#allocation2] sm:$0xff]  ;;  %v670_v3 = vpack.c.bf16 %v26_v1, %v25_v0  ;;  %v28_v4 = vld [vmem:[#allocation2 + $0x8] sm:$0xff]  ;;  %v29_v5 = vld [vmem:[#allocation2 + $0x10] sm:$0xff] }
  0x14   :  { %626 = vmatprep.mubr.msk.f32.mxu0 %vm80_vm0, %v27_v2  ;;  %v30_v6 = vld [vmem:[#allocation2 + $0x18] sm:$0xff]  ;;  %v31_v7 = vld [vmem:[#allocation2 + $0x20] sm:$0xff]  ;;  %v32_v8 = vld [vmem:[#allocation2 + $0x28] sm:$0xff] }
  0x15   :  { %671 = vmatprep.subr.bf16.mxu0 %v670_v3  ;;  %v33_v9 = vld [vmem:[#allocation2 + $0x30] sm:$0xff]  ;;  %v34_v10 = vld [vmem:[#allocation2 + $0x38] sm:$0xff]  ;;  %v35_v11 = vld [vmem:[#allocation2 + $0x40] sm:$0xff] }
  0x16   :  { %673 = vmatpush3.bf16.msra.mxu0 %v670_v3  ;;  %v36_v12 = vld [vmem:[#allocation2 + $0x48] sm:$0xff]  ;;  %v37_v13 = vld [vmem:[#allocation2 + $0x50] sm:$0xff]  ;;  %v38_v14 = vld [vmem:[#allocation2 + $0x58] sm:$0xff] }
  0x17   :  { %v39_v15 = vld [vmem:[#allocation2 + $0x60] sm:$0xff]  ;;  %v52_v16 = vld [vmem:[#allocation2 + $0xc8] sm:$0xff]  ;;  %v54_v22 = vld [vmem:[#allocation2 + $0xd8] sm:$0xff] }
  0x18   :  { %652 = vmatprep.mubr.msk.f32.mxu1 %vm306_vm1, %v39_v15  ;;  %v51_v17 = vld [vmem:[#allocation2 + $0xc0] sm:$0xff]  ;;  %v53_v24 = vld [vmem:[#allocation2 + $0xd0] sm:$0xff]  ;;  %v56_v30 = vld [vmem:[#allocation2 + $0xe8] sm:$0xff] }
  0x19   :  { %627 = vmatmul.mubr.msk.f32.vlgmr.msra.gmra.mrb[0].mxu0 %vm80_vm0, %v28_v4  ;;  %v55_v32 = vld [vmem:[#allocation2 + $0xe0] sm:$0xff]  ;;  %v58_v38 = vld [vmem:[#allocation2 + $0xf8] sm:$0xff]  ;;  %v57_v39 = vld [vmem:[#allocation2 + $0xf0] sm:$0xff] }
  0x1a   :  { %629 = vmatprep.mubr.msk.f32.mxu0 %vm80_vm0, %v29_v5  ;;  %v60_v46 = vld [vmem:[#allocation2 + $0x108] sm:$0xff]  ;;  %v59_v55 = vld [vmem:[#allocation2 + $0x100] sm:$0xff]  ;;  %v62_v57 = vld [vmem:[#allocation2 + $0x118] sm:$0xff] }
  0x1b   :  { %v61_v1 = vld [vmem:[#allocation2 + $0x110] sm:$0xff] }
  0x1d   :  { %630 = vmatmul.mubr.msk.f32.gmra.mrb[2].mxu0 %vm80_vm0, %v30_v6 }
  0x1e   :  { %632 = vmatprep.mubr.msk.f32.mxu0 %vm80_vm0, %v31_v7 }
  0x21   :  { %633 = vmatmul.mubr.msk.f32.gmra.mrb[4].mxu0 %vm80_vm0, %v32_v8 }
  0x22   :  { %635 = vmatprep.mubr.msk.f32.mxu0 %vm80_vm0, %v33_v9 }
  0x25   :  { %636 = vmatmul.mubr.msk.f32.gmra.mrb[6].mxu0 %vm80_vm0, %v34_v10 }
  0x26   :  { %638 = vmatprep.mubr.msk.f32.mxu0 %vm80_vm0, %v35_v11 }
  0x29   :  { %639 = vmatmul.mubr.msk.f32.gmra.mrb[8].mxu0 %vm80_vm0, %v36_v12 }
  0x2a   :  { %641 = vmatprep.mubr.msk.f32.mxu0 %vm80_vm0, %v37_v13 }
  0x2d   :  { %642 = vmatmul.mubr.msk.f32.gmra.mrb[10].mxu0 %vm80_vm0, %v38_v14 }
  0xec   :  { %v628_v18 = vpop.f32.mrb[0].mxu0 }
  0xed   :  { %v189_v19 = vadd.f32 %v628_v18, %v52_v16  ;;  %v183_v20 = vpop.f32.mrb[1].mxu0 }
  0xee   :  { %v184_v21 = vadd.f32 %v183_v20, %v51_v17 }
  0xef   :  { %v565_v23 = vmul.f32 -1.442695, %v189_v19 }
  0xf0   :  { %v564_v25 = vmul.f32 -1.442695, %v184_v21  ;;  %v631_v26 = vpop.f32.mrb[2].mxu0 }
  0xf1   :  { %685 = vpow2.f32 %v565_v23  ;;  %v199_v27 = vadd.f32 %v631_v26, %v54_v22  ;;  %v193_v28 = vpop.f32.mrb[3].mxu0 }
  0xf2   :  { %687 = vpow2.f32 %v564_v25  ;;  %v194_v29 = vadd.f32 %v193_v28, %v53_v24 }
  0xf3   :  { %v567_v31 = vmul.f32 -1.442695, %v199_v27 }
  0xf4   :  { %v566_v33 = vmul.f32 -1.442695, %v194_v29  ;;  %v634_v34 = vpop.f32.mrb[4].mxu0 }
  0xf5   :  { %689 = vpow2.f32 %v567_v31  ;;  %v209_v35 = vadd.f32 %v634_v34, %v56_v30  ;;  %v203_v36 = vpop.f32.mrb[5].mxu0 }
  0xf6   :  { %691 = vpow2.f32 %v566_v33  ;;  %v204_v37 = vadd.f32 %v203_v36, %v55_v32 }
  0xf7   :  { %v569_v40 = vmul.f32 -1.442695, %v209_v35 }
  0xf8   :  { %v637_v41 = vpop.f32.mrb[6].mxu0  ;;  %v568_v42 = vmul.f32 -1.442695, %v204_v37 }
  0xf9   :  { %v219_v43 = vadd.f32 %v637_v41, %v58_v38  ;;  %v213_v44 = vpop.f32.mrb[7].mxu0  ;;  %693 = vpow2.f32 %v569_v40  ;;  %v40_v38 = vld [vmem:[#allocation2 + $0x68] sm:$0xff]  ;;  %v42_v40 = vld [vmem:[#allocation2 + $0x78] sm:$0xff]  ;;  %v43_v41 = vld [vmem:[#allocation2 + $0x80] sm:$0xff] }
  0xfa   :  { %v214_v45 = vadd.f32 %v213_v44, %v57_v39  ;;  %695 = vpow2.f32 %v568_v42  ;;  %v41_v39 = vld [vmem:[#allocation2 + $0x70] sm:$0xff]  ;;  %v44_v42 = vld [vmem:[#allocation2 + $0x88] sm:$0xff]  ;;  %v46_v44 = vld [vmem:[#allocation2 + $0x98] sm:$0xff] }
  0xfb   :  { %v686_v47 = vpop.eup %685  ;;  %v571_v48 = vmul.f32 -1.442695, %v219_v43  ;;  %v45_v43 = vld [vmem:[#allocation2 + $0x90] sm:$0xff] }
  0xfc   :  { %v688_v49 = vpop.eup %687  ;;  %v267_v50 = vadd.f32 1.0, %v686_v47  ;;  %v640_v51 = vpop.f32.mrb[8].mxu0  ;;  %v570_v56 = vmul.f32 -1.442695, %v214_v45  ;;  %v47_v45 = vld [vmem:[#allocation2 + $0xa0] sm:$0xff]  ;;  %v49_v47 = vld [vmem:[#allocation2 + $0xb0] sm:$0xff] }
  0xfd   :  { %v266_v52 = vadd.f32 1.0, %v688_v49  ;;  %v229_v53 = vadd.f32 %v640_v51, %v60_v46  ;;  %v223_v54 = vpop.f32.mrb[9].mxu0  ;;  %697 = vpow2.f32 %v571_v48  ;;  %v48_v46 = vld [vmem:[#allocation2 + $0xa8] sm:$0xff]  ;;  %v50_v48 = vld [vmem:[#allocation2 + $0xb8] sm:$0xff] }
  0xfe   :  { %699 = vrcp.f32 %v267_v50  ;;  %v224_v61 = vadd.f32 %v223_v54, %v59_v55  ;;  %v64_v49 = vld [vmem:[#allocation2 + $0x128] sm:$0xff]  ;;  %v63_v50 = vld [vmem:[#allocation2 + $0x120] sm:$0xff]  ;;  %v66_v55 = vld [vmem:[#allocation2 + $0x138] sm:$0xff] }
  0xff   :  { %v690_v58 = vpop.eup %689  ;;  %701 = vrcp.f32 %v266_v52 }
 0x100   :  { %v692_v59 = vpop.eup %691  ;;  %v269_v60 = vadd.f32 1.0, %v690_v58  ;;  %v643_v62 = vpop.f32.mrb[10].mxu0  ;;  %703 = vtanh.f32 %v229_v53 }
 0x101   :  { %v239_v63 = vadd.f32 %v643_v62, %v62_v57  ;;  %v233_v0 = vpop.f32.mrb[11].mxu0  ;;  %v268_v2 = vadd.f32 1.0, %v692_v59  ;;  %705 = vpow2.f32 %v570_v56  ;;  %v65_v57 = vld [vmem:[#allocation2 + $0x130] sm:$0xff] }
 0x102   :  { %707 = vrcp.f32 %v269_v60  ;;  %v234_v3 = vadd.f32 %v233_v0, %v61_v1  ;;  %v67_v1 = vld [vmem:[#allocation2 + $0x140] sm:$0xff] }
 0x103   :  { %709 = vtanh.f32 %v224_v61  ;;  %v694_v4 = vpop.eup %693 }
 0x104   :  { %711 = vtanh.f32 %v239_v63  ;;  %v696_v5 = vpop.eup %695  ;;  %v271_v8 = vadd.f32 1.0, %v694_v4  ;;  %v68_v63 = vld [vmem:[#allocation2 + $0x148] sm:$0xff] }
 0x105   :  { %713 = vrcp.f32 %v268_v2  ;;  %v270_v11 = vadd.f32 1.0, %v696_v5 }
 0x106   :  { %715 = vtanh.f32 %v234_v3 }
 0x107   :  { %v698_v6 = vpop.eup %697  ;;  %717 = vrcp.f32 %v271_v8  ;;  %v69_v8 = vld [vmem:[#allocation2 + $0x150] sm:$0xff] }
 0x108   :  { %v700_v7 = vpop.eup %699  ;;  %v273_v13 = vadd.f32 1.0, %v698_v6 }
 0x109   :  { %v702_v9 = vpop.eup %701 }
 0x10a   :  { %v704_v10 = vpop.eup %703 }
 0x10b   :  { %v706_v12 = vpop.eup %705  ;;  %v295_v14 = vmul.f32 %v704_v10, %v700_v7  ;;  %v70_v7 = vld [vmem:[#allocation2 + $0x158] sm:$0xff] }
 0x10c   :  { %v708_v15 = vpop.eup %707  ;;  %v272_v20 = vadd.f32 1.0, %v706_v12 }
 0x10d   :  { %v710_v16 = vpop.eup %709  ;;  %719 = vtanh.f32 %v295_v14 }
 0x10e   :  { %v712_v17 = vpop.eup %711  ;;  %721 = vrcp.f32 %v270_v11  ;;  %v294_v18 = vmul.f32 %v710_v16, %v702_v9 }
 0x10f   :  { %v714_v19 = vpop.eup %713  ;;  %723 = vrcp.f32 %v273_v13  ;;  %v297_v21 = vmul.f32 %v712_v17, %v708_v15  ;;  %v72_v15 = vld [vmem:[#allocation2 + $0x168] sm:$0xff] }
 0x110   :  { %725 = vtanh.f32 %v294_v18  ;;  %v716_v22 = vpop.eup %715 }
 0x111   :  { %727 = vtanh.f32 %v297_v21  ;;  %v296_v23 = vmul.f32 %v716_v22, %v714_v19  ;;  %v718_v24 = vpop.eup %717 }
 0x112   :  { %729 = vrcp.f32 %v272_v20 }
 0x113   :  { %731 = vtanh.f32 %v296_v23 }
 0x117   :  { %v720_v25 = vpop.eup %719 }
 0x118   :  { %v722_v26 = vpop.eup %721  ;;  %v303_v27 = vmul.f32 %v720_v25, %v718_v24  ;;  %v71_v24 = vld [vmem:[#allocation2 + $0x160] sm:$0xff] }
 0x119   :  { %v724_v28 = vpop.eup %723 }
 0x11a   :  { %v726_v29 = vpop.eup %725 }
 0x11b   :  { %v728_v30 = vpop.eup %727  ;;  %v302_v31 = vmul.f32 %v726_v29, %v722_v26  ;;  %v74_v26 = vld [vmem:[#allocation2 + $0x178] sm:$0xff] }
 0x11c   :  { %v305_v32 = vmul.f32 %v728_v30, %v724_v28  ;;  %v730_v33 = vpop.eup %729 }
 0x11d   :  { %v674_v34 = vpack.c.bf16 %v303_v27, %v302_v31  ;;  %v732_v35 = vpop.eup %731 }
 0x11e   :  { %v304_v36 = vmul.f32 %v732_v35, %v730_v33 }
 0x11f   :  { %675 = vmatprep.subr.bf16.mxu1 %v674_v34 }
 0x120   :  { %677 = vmatpush3.bf16.msra.mxu1 %v674_v34  ;;  %v678_v37 = vpack.c.bf16 %v305_v32, %v304_v36  ;;  %v73_v34 = vld [vmem:[#allocation2 + $0x170] sm:$0xff] }
 0x122   :  { %679 = vmatprep.subr.bf16.mxu1 %v678_v37 }
 0x124   :  { %681 = vmatpush3.bf16.msra.mxu1 %v678_v37 }
 0x127   :  { %653 = vmatmul.mubr.msk.f32.vlgmr.msra.gmra.mrb[0].mxu1 %vm306_vm1, %v40_v38 }
 0x128   :  { %655 = vmatprep.mubr.msk.f32.mxu1 %vm306_vm1, %v41_v39 }
 0x12b   :  { %656 = vmatmul.mubr.msk.f32.gmra.mrb[2].mxu1 %vm306_vm1, %v42_v40 }
 0x12c   :  { %658 = vmatprep.mubr.msk.f32.mxu1 %vm306_vm1, %v43_v41 }
 0x12f   :  { %659 = vmatmul.mubr.msk.f32.gmra.mrb[4].mxu1 %vm306_vm1, %v44_v42 }
 0x130   :  { %661 = vmatprep.mubr.msk.f32.mxu1 %vm306_vm1, %v45_v43 }
 0x133   :  { %662 = vmatmul.mubr.msk.f32.gmra.mrb[6].mxu1 %vm306_vm1, %v46_v44 }
 0x134   :  { %664 = vmatprep.mubr.msk.f32.mxu1 %vm306_vm1, %v47_v45 }
 0x137   :  { %665 = vmatmul.mubr.msk.f32.gmra.mrb[8].mxu1 %vm306_vm1, %v48_v46 }
 0x138   :  { %667 = vmatprep.mubr.msk.f32.mxu1 %vm306_vm1, %v49_v47 }
 0x13b   :  { %668 = vmatmul.mubr.msk.f32.gmra.mrb[10].mxu1 %vm306_vm1, %v50_v48 }
 0x1fa   :  { %v654_v51 = vpop.f32.mrb[0].mxu1 }
 0x1fb   :  { %v415_v52 = vadd.f32 %v654_v51, %v64_v49  ;;  %v409_v53 = vpop.f32.mrb[1].mxu1 }
 0x1fc   :  { %v410_v54 = vadd.f32 %v409_v53, %v63_v50 }
 0x1fd   :  { %v585_v56 = vmul.f32 -1.442695, %v415_v52 }
 0x1fe   :  { %v584_v58 = vmul.f32 -1.442695, %v410_v54  ;;  %v657_v59 = vpop.f32.mrb[2].mxu1 }
 0x1ff   :  { %733 = vpow2.f32 %v585_v56  ;;  %v425_v60 = vadd.f32 %v657_v59, %v66_v55  ;;  %v419_v61 = vpop.f32.mrb[3].mxu1 }
 0x200   :  { %735 = vpow2.f32 %v584_v58  ;;  %v420_v62 = vadd.f32 %v419_v61, %v65_v57 }
 0x201   :  { %v587_v0 = vmul.f32 -1.442695, %v425_v60  ;;  %v76_v60 = vld [vmem:[#allocation2 + $0x188] sm:$0xff] }
 0x202   :  { %v586_v2 = vmul.f32 -1.442695, %v420_v62  ;;  %v660_v3 = vpop.f32.mrb[4].mxu1 }
 0x203   :  { %737 = vpow2.f32 %v587_v0  ;;  %v435_v4 = vadd.f32 %v660_v3, %v68_v63  ;;  %v429_v5 = vpop.f32.mrb[5].mxu1  ;;  %v75_v0 = vld [vmem:[#allocation2 + $0x180] sm:$0xff] }
 0x204   :  { %739 = vpow2.f32 %v586_v2  ;;  %v430_v6 = vadd.f32 %v429_v5, %v67_v1 }
 0x205   :  { %v589_v9 = vmul.f32 -1.442695, %v435_v4 }
 0x206   :  { %v663_v10 = vpop.f32.mrb[6].mxu1  ;;  %v588_v11 = vmul.f32 -1.442695, %v430_v6 }
 0x207   :  { %v445_v12 = vadd.f32 %v663_v10, %v70_v7  ;;  %v439_v13 = vpop.f32.mrb[7].mxu1  ;;  %741 = vpow2.f32 %v589_v9 }
 0x208   :  { %v440_v14 = vadd.f32 %v439_v13, %v69_v8  ;;  %743 = vpow2.f32 %v588_v11  ;;  %v77_v8 = vld [vmem:[#allocation2 + $0x190] sm:$0xff]  ;;  %v78_v11 = vld [vmem:[#allocation2 + $0x198] sm:$0xff] }
 0x209   :  { %v734_v16 = vpop.eup %733  ;;  %v591_v17 = vmul.f32 -1.442695, %v445_v12 }
 0x20a   :  { %v736_v18 = vpop.eup %735  ;;  %v493_v19 = vadd.f32 1.0, %v734_v16  ;;  %v666_v20 = vpop.f32.mrb[8].mxu1  ;;  %v590_v25 = vmul.f32 -1.442695, %v440_v14 }
 0x20b   :  { %v492_v21 = vadd.f32 1.0, %v736_v18  ;;  %v455_v22 = vadd.f32 %v666_v20, %v72_v15  ;;  %v449_v23 = vpop.f32.mrb[9].mxu1  ;;  %745 = vpow2.f32 %v591_v17 }
 0x20c   :  { %747 = vrcp.f32 %v493_v19  ;;  %v450_v30 = vadd.f32 %v449_v23, %v71_v24 }
 0x20d   :  { %v738_v27 = vpop.eup %737  ;;  %749 = vrcp.f32 %v492_v21  ;;  %v79_v21 = vld [vmem:[#allocation2 + $0x1a0] sm:$0x1] }
 0x20e   :  { %v740_v28 = vpop.eup %739  ;;  %v495_v29 = vadd.f32 1.0, %v738_v27  ;;  %v669_v31 = vpop.f32.mrb[10].mxu1  ;;  %751 = vtanh.f32 %v455_v22 }
 0x20f   :  { %v465_v32 = vadd.f32 %v669_v31, %v74_v26  ;;  %v459_v33 = vpop.f32.mrb[11].mxu1  ;;  %v494_v35 = vadd.f32 1.0, %v740_v28  ;;  %753 = vpow2.f32 %v590_v25 }
 0x210   :  { %755 = vrcp.f32 %v495_v29  ;;  %v460_v36 = vadd.f32 %v459_v33, %v73_v34 }
 0x211   :  { %757 = vtanh.f32 %v450_v30  ;;  %v742_v37 = vpop.eup %741 }
 0x212   :  { %759 = vtanh.f32 %v465_v32  ;;  %v744_v38 = vpop.eup %743  ;;  %v497_v41 = vadd.f32 1.0, %v742_v37 }
 0x213   :  { %761 = vrcp.f32 %v494_v35  ;;  %v496_v44 = vadd.f32 1.0, %v744_v38 }
 0x214   :  { %763 = vtanh.f32 %v460_v36 }
 0x215   :  { %v746_v39 = vpop.eup %745  ;;  %765 = vrcp.f32 %v497_v41 }
 0x216   :  { %v748_v40 = vpop.eup %747  ;;  %v499_v46 = vadd.f32 1.0, %v746_v39 }
 0x217   :  { %v750_v42 = vpop.eup %749 }
 0x218   :  { %v752_v43 = vpop.eup %751 }
 0x219   :  { %v754_v45 = vpop.eup %753  ;;  %v521_v47 = vmul.f32 %v752_v43, %v748_v40 }
 0x21a   :  { %v756_v48 = vpop.eup %755  ;;  %v498_v53 = vadd.f32 1.0, %v754_v45 }
 0x21b   :  { %v758_v49 = vpop.eup %757  ;;  %767 = vtanh.f32 %v521_v47 }
 0x21c   :  { %v760_v50 = vpop.eup %759  ;;  %769 = vrcp.f32 %v496_v44  ;;  %v520_v51 = vmul.f32 %v758_v49, %v750_v42 }
 0x21d   :  { %v762_v52 = vpop.eup %761  ;;  %771 = vrcp.f32 %v499_v46  ;;  %v523_v54 = vmul.f32 %v760_v50, %v756_v48 }
 0x21e   :  { %773 = vtanh.f32 %v520_v51  ;;  %v764_v55 = vpop.eup %763 }
 0x21f   :  { %775 = vtanh.f32 %v523_v54  ;;  %v522_v56 = vmul.f32 %v764_v55, %v762_v52  ;;  %v766_v57 = vpop.eup %765 }
 0x220   :  { %777 = vrcp.f32 %v498_v53 }
 0x221   :  { %779 = vtanh.f32 %v522_v56 }
 0x225   :  { %v768_v58 = vpop.eup %767 }
 0x226   :  { %v770_v59 = vpop.eup %769  ;;  %v529_v61 = vmul.f32 %v768_v58, %v766_v57 }
 0x227   :  { %v772_v62 = vpop.eup %771 }
 0x228   :  { %v774_v63 = vpop.eup %773  ;;  %v533_v2 = vmul.f32 %v529_v61, %v76_v60 }
 0x229   :  { %v776_v1 = vpop.eup %775  ;;  %v528_v3 = vmul.f32 %v774_v63, %v770_v59 }
 0x22a   :  { %v531_v4 = vmul.f32 %v776_v1, %v772_v62  ;;  %v778_v5 = vpop.eup %777 }
 0x22b   :  { %v532_v6 = vmul.f32 %v528_v3, %v75_v0  ;;  %v780_v7 = vpop.eup %779 }
 0x22c   :  { %v530_v10 = vmul.f32 %v780_v7, %v778_v5  ;;  %v535_v13 = vmul.f32 %v531_v4, %v78_v11 }
 0x22d   :  { %v536_v9 = vadd.f32 %v533_v2, %v532_v6 }
 0x22e   :  { %v534_v12 = vmul.f32 %v530_v10, %v77_v8 }
 0x230   :  { %v537_v14 = vadd.f32 %v536_v9, %v534_v12 }
 0x232   :  { %v538_v15 = vadd.f32 %v537_v14, %v535_v13 }
 0x234   :  { %v539_v16 = vrot.slane %v538_v15, 4 }
 0x236   :  { %v540_v17 = vadd.f32 %v539_v16, %v538_v15 }
 0x238   :  { %v541_v18 = vrot.slane %v540_v17, 2 }
 0x23a   :  { %v542_v19 = vadd.f32 %v541_v18, %v540_v17 }
 0x23c   :  { %v543_v20 = vrot.slane %v542_v19, 1 }
 0x23e   :  { %v544_v22 = vadd.f32 %v543_v20, %v542_v19 }
 0x240   :  { %v545_v23 = vadd.f32 %v544_v22, %v79_v21 }
 0x242   :  { %546 = vst [vmem:[%s870_s2] sm:$0x1] %v545_v23 }
 0x243   :  { %551 = vsyncpa [#allocation3], 1 }

</bundles_post_ra>
